<compile_context>
chip_gen: v7x
topology: tpu7x:2x2x1
jax: 0.10.0
libtpu: 0.0.40
codegen_flags: <defaults>
</compile_context>

<pallas_src>
from functools import partial

import jax
import jax.numpy as jnp
from jax.experimental import pallas as pl
from jax.experimental.pallas import tpu as pltpu


def _make_divisible(v, divisor=8, min_value=None):
    if min_value is None:
        min_value = divisor
    new_v = max(min_value, int(v + divisor / 2) // divisor * divisor)
    if new_v < 0.9 * v:
        new_v += divisor
    return new_v


def fused_mbconv_kernel(pt_ref, w1t_ref, b1_ref, w2t_ref, b2_ref, o_ref,
                        *, center_row, cout):
    """One image per grid step; pixel dim on lanes, channel dim on sublanes.

    pt_ref : (K*K*Cin, M)   transposed im2col patch matrix for this image
    w1t_ref: (Cexp, K*K*Cin) 3x3 conv weight (BN folded), transposed
    b1_ref : (Cexp, 1)       folded BN bias for conv1 (column vector)
    w2t_ref: (Cout, Cexp)    1x1 conv weight (BN folded), transposed
    b2_ref : (Cout, 1)       folded BN bias for conv2
    o_ref  : (Cout, M)
    """
    pt = pt_ref[...]                                     # one unmasked lane-dense load

    # 3x3 conv as a single im2col matmul on the MXU: (Cexp, 72) @ (72, M).
    h = jnp.dot(w1t_ref[...], pt, preferred_element_type=jnp.float32)
    h = h + b1_ref[...]                                  # folded BN bias (lane broadcast)
    h = h * jax.nn.sigmoid(h)                            # SiLU (sigmoid goes to the EUP)

    # 1x1 projection conv + folded BN: (Cout, Cexp) @ (Cexp, M).
    y = jnp.dot(w2t_ref[...], h, preferred_element_type=jnp.float32) + b2_ref[...]

    # Residual: the center (kh=kw=K//2) tap of the patch matrix is the original
    # image (stride 1, SAME pad).  Static, sublane-aligned slice -> free.
    res = pt[center_row:center_row + cout, :]
    o_ref[...] = (y + res).astype(o_ref.dtype)           # stochastic depth = identity (eval)


def fused_mbconv(x_nchw, w1, b1, w2, b2):
    """x_nchw: (N,Cin,H,W); w1: (K,K,Cin,Cexp) BN-folded; b1: (Cexp,);
    w2: (Cexp,Cout) BN-folded; b2: (Cout,).  Returns (N,Cout,H,W)."""
    N, Cin, H, W = x_nchw.shape
    K = w1.shape[0]
    Cexp = w1.shape[-1]
    Cout = w2.shape[-1]
    # Assumptions of this block config (stride 1 expand path with residual):
    assert Cin == Cout, "residual path requires input_channels == out_channels"
    assert K % 2 == 1, "center-tap residual requires an odd kernel"
    pad = (K - 1) // 2
    M = H * W
    KKC = K * K * Cin

    # ---- layout plumbing in plain JAX (channel-major, no big-slab transpose) ----
    xpad = jnp.pad(x_nchw, ((0, 0), (0, 0), (pad, pad), (pad, pad)))
    # im2col with rows in (kh, kw, cin) order (matches w1.reshape(KKC, Cexp)),
    # pixel dim last so it lands on TPU lanes:
    pt = jnp.concatenate(
        [xpad[:, :, kh:kh + H, kw:kw + W].reshape(N, Cin, M)
         for kh in range(K) for kw in range(K)],
        axis=1)                                          # (N, KKC, M)
    # Rows of the (kh,kw) = (K//2,K//2) tap == the unshifted input image.
    center_row = ((K // 2) * K + (K // 2)) * Cin

    w1t = w1.reshape(KKC, Cexp).T                        # (Cexp, KKC)
    w2t = w2.T                                           # (Cout, Cexp)
    b1c = b1.reshape(Cexp, 1)
    b2c = b2.reshape(Cout, 1)

    out = pl.pallas_call(
        partial(fused_mbconv_kernel, center_row=center_row, cout=Cout),
        out_shape=jax.ShapeDtypeStruct((N, Cout, M), x_nchw.dtype),
        grid=(N,),
        in_specs=[
            pl.BlockSpec((None, KKC, M), lambda n: (n, 0, 0)),   # per-image contiguous patch block
            pl.BlockSpec((Cexp, KKC), lambda n: (0, 0)),         # w1^T (resident)
            pl.BlockSpec((Cexp, 1), lambda n: (0, 0)),           # b1
            pl.BlockSpec((Cout, Cexp), lambda n: (0, 0)),        # w2^T (resident)
            pl.BlockSpec((Cout, 1), lambda n: (0, 0)),           # b2
        ],
        out_specs=pl.BlockSpec((None, Cout, M), lambda n: (n, 0, 0)),
        compiler_params=pltpu.CompilerParams(dimension_semantics=("parallel",)),
    )(pt, w1t, b1c, w2t, b2c)

    # Output is already channel-major NCHW (PyTorch layout): metadata-only reshape.
    return out.reshape(N, Cout, H, W)


if __name__ == "__main__":
    key = jax.random.PRNGKey(0)
    N, H, W = 2, 16, 16
    Cin, Cout = 8, 8
    K = 3
    expand_ratio = 4.0
    Cexp = _make_divisible(Cin * expand_ratio, 8)   # 32
    eps = 1e-5

    ks = jax.random.split(key, 12)
    x = jax.random.normal(ks[0], (N, Cin, H, W), jnp.float32)   # NCHW (PyTorch layout)

    # Conv1 (3x3, bias=False) + BN1 params
    w1_raw = jax.random.normal(ks[1], (K, K, Cin, Cexp), jnp.float32) * 0.1
    g1 = jax.random.uniform(ks[2], (Cexp,), minval=0.5, maxval=1.5)
    be1 = jax.random.normal(ks[3], (Cexp,)) * 0.1
    m1 = jax.random.normal(ks[4], (Cexp,)) * 0.1
    v1 = jax.random.uniform(ks[5], (Cexp,), minval=0.5, maxval=1.5)

    # Conv2 (1x1, bias=False) + BN2 params
    w2_raw = jax.random.normal(ks[6], (Cexp, Cout), jnp.float32) * 0.1
    g2 = jax.random.uniform(ks[7], (Cout,), minval=0.5, maxval=1.5)
    be2 = jax.random.normal(ks[8], (Cout,)) * 0.1
    m2 = jax.random.normal(ks[9], (Cout,)) * 0.1
    v2 = jax.random.uniform(ks[10], (Cout,), minval=0.5, maxval=1.5)

    # Fold eval-mode BatchNorm into conv weights/bias (glue, not hot path).
    s1 = g1 / jnp.sqrt(v1 + eps)
    w1 = w1_raw * s1
    b1 = be1 - m1 * s1
    s2 = g2 / jnp.sqrt(v2 + eps)
    w2 = w2_raw * s2
    b2 = be2 - m2 * s2

    out = fused_mbconv(x, w1, b1, w2, b2)
    jax.block_until_ready(out)

    # Pure-JAX reference (mirrors PyTorch eval forward semantics, NCHW).
    conv1 = jax.lax.conv_general_dilated(
        x, w1_raw, window_strides=(1, 1), padding="SAME",
        dimension_numbers=("NCHW", "HWIO", "NCHW"))                  # (N, Cexp, H, W)
    h = (conv1 - m1[:, None, None]) * s1[:, None, None] + be1[:, None, None]
    h = h * jax.nn.sigmoid(h)
    conv2 = jnp.einsum("nchw,cd->ndhw", h, w2_raw)                   # (N, Cout, H, W)
    y = (conv2 - m2[:, None, None]) * s2[:, None, None] + be2[:, None, None]
    ref = y + x

    assert jnp.allclose(out, ref, atol=1e-3, rtol=1e-3), \
        f"max err {jnp.max(jnp.abs(out - ref))}"
    print("KERNEL_OK")
</pallas_src>

<mosaic_0001>
module attributes {stable_mosaic.version = 11 : i64} {
  func.func @fused_mbconv_kernel(%arg0: i32, %arg1: memref<1x72x256xf32, #tpu.memory_space<vmem>>, %arg2: memref<32x72xf32, #tpu.memory_space<vmem>>, %arg3: memref<32x1xf32, #tpu.memory_space<vmem>>, %arg4: memref<8x32xf32, #tpu.memory_space<vmem>>, %arg5: memref<8x1xf32, #tpu.memory_space<vmem>>, %arg6: memref<1x8x256xf32, #tpu.memory_space<vmem>>) attributes {dimension_semantics = [#tpu.dimension_semantics<parallel>], iteration_bounds = array<i64: 2>, scalar_prefetch = 0 : i64, scratch_operands = 0 : i64, tpu.core_type = #tpu.core_type<tc>, window_params = [{transform_indices = @transform_0, window_bounds = array<i64: 1, 72, 256>}, {pipeline_mode = #tpu.pipeline_mode<synchronous>, transform_indices = @transform_1, window_bounds = array<i64: 32, 72>}, {pipeline_mode = #tpu.pipeline_mode<synchronous>, transform_indices = @transform_2, window_bounds = array<i64: 32, 1>}, {pipeline_mode = #tpu.pipeline_mode<synchronous>, transform_indices = @transform_3, window_bounds = array<i64: 8, 32>}, {pipeline_mode = #tpu.pipeline_mode<synchronous>, transform_indices = @transform_4, window_bounds = array<i64: 8, 1>}, {transform_indices = @transform_5, window_bounds = array<i64: 1, 8, 256>}]} {
    %c0 = arith.constant 0 : index
    %c0_0 = arith.constant 0 : index
    %c0_1 = arith.constant 0 : index
    %0 = vector.load %arg1[%c0, %c0_0, %c0_1] : memref<1x72x256xf32, #tpu.memory_space<vmem>>, vector<1x72x256xf32>
    %1 = vector.shape_cast %0 : vector<1x72x256xf32> to vector<72x256xf32>
    %c0_2 = arith.constant 0 : index
    %c0_3 = arith.constant 0 : index
    %2 = vector.load %arg2[%c0_2, %c0_3] : memref<32x72xf32, #tpu.memory_space<vmem>>, vector<32x72xf32>
    %cst = arith.constant dense<0.000000e+00> : vector<32x256xf32>
    %3 = tpu.matmul %2, %1, %cst {dimension_numbers = #tpu.dot_dimension_numbers<[1], [0], [0], [1], [0, 0, 1, 1], [], []>} : vector<32x72xf32>, vector<72x256xf32>, vector<32x256xf32> -> vector<32x256xf32>
    %c0_4 = arith.constant 0 : index
    %c0_5 = arith.constant 0 : index
    %4 = vector.load %arg3[%c0_4, %c0_5] : memref<32x1xf32, #tpu.memory_space<vmem>>, vector<32x1xf32>
    %5 = vector.broadcast %4 : vector<32x1xf32> to vector<32x256xf32>
    %6 = arith.addf %3, %5 : vector<32x256xf32>
    %7 = arith.negf %6 : vector<32x256xf32>
    %8 = math.exp %7 : vector<32x256xf32>
    %cst_6 = arith.constant 1.000000e+00 : f32
    %9 = vector.broadcast %cst_6 : f32 to vector<32x256xf32>
    %10 = arith.addf %9, %8 : vector<32x256xf32>
    %11 = arith.divf %9, %10 : vector<32x256xf32>
    %12 = arith.mulf %6, %11 : vector<32x256xf32>
    %c0_7 = arith.constant 0 : index
    %c0_8 = arith.constant 0 : index
    %13 = vector.load %arg4[%c0_7, %c0_8] : memref<8x32xf32, #tpu.memory_space<vmem>>, vector<8x32xf32>
    %cst_9 = arith.constant dense<0.000000e+00> : vector<8x256xf32>
    %14 = tpu.matmul %13, %12, %cst_9 {dimension_numbers = #tpu.dot_dimension_numbers<[1], [0], [0], [1], [0, 0, 1, 1], [], []>} : vector<8x32xf32>, vector<32x256xf32>, vector<8x256xf32> -> vector<8x256xf32>
    %c0_10 = arith.constant 0 : index
    %c0_11 = arith.constant 0 : index
    %15 = vector.load %arg5[%c0_10, %c0_11] : memref<8x1xf32, #tpu.memory_space<vmem>>, vector<8x1xf32>
    %16 = vector.broadcast %15 : vector<8x1xf32> to vector<8x256xf32>
    %17 = arith.addf %14, %16 : vector<8x256xf32>
    %18 = vector.extract_strided_slice %1 {offsets = [32, 0], sizes = [8, 256], strides = [1, 1]} : vector<72x256xf32> to vector<8x256xf32>
    %19 = arith.addf %17, %18 : vector<8x256xf32>
    %c0_12 = arith.constant 0 : index
    %c0_13 = arith.constant 0 : index
    %c0_14 = arith.constant 0 : index
    %20 = vector.load %arg6[%c0_12, %c0_13, %c0_14] : memref<1x8x256xf32, #tpu.memory_space<vmem>>, vector<1x8x256xf32>
    %21 = vector.shape_cast %20 : vector<1x8x256xf32> to vector<8x256xf32>
    %22 = vector.shape_cast %19 : vector<8x256xf32> to vector<1x8x256xf32>
    tpu.vector_store %arg6[%c0_12, %c0_13, %c0_14], %22 {strides = array<i32>} : memref<1x8x256xf32, #tpu.memory_space<vmem>>, vector<1x8x256xf32>,
    return
  }
  func.func @transform_0(%arg0: i32) -> (i32, i32, i32) {
    %c0_i32 = arith.constant 0 : i32
    %c0_i32_0 = arith.constant 0 : i32
    %c0_i32_1 = arith.constant 0 : i32
    return %arg0, %c0_i32, %c0_i32_0 : i32, i32, i32
  }
  func.func @transform_1(%arg0: i32) -> (i32, i32) {
    %c0_i32 = arith.constant 0 : i32
    %c0_i32_0 = arith.constant 0 : i32
    %c0_i32_1 = arith.constant 0 : i32
    return %c0_i32, %c0_i32_0 : i32, i32
  }
  func.func @transform_2(%arg0: i32) -> (i32, i32) {
    %c0_i32 = arith.constant 0 : i32
    %c0_i32_0 = arith.constant 0 : i32
    %c0_i32_1 = arith.constant 0 : i32
    return %c0_i32, %c0_i32_0 : i32, i32
  }
  func.func @transform_3(%arg0: i32) -> (i32, i32) {
    %c0_i32 = arith.constant 0 : i32
    %c0_i32_0 = arith.constant 0 : i32
    %c0_i32_1 = arith.constant 0 : i32
    return %c0_i32, %c0_i32_0 : i32, i32
  }
  func.func @transform_4(%arg0: i32) -> (i32, i32) {
    %c0_i32 = arith.constant 0 : i32
    %c0_i32_0 = arith.constant 0 : i32
    %c0_i32_1 = arith.constant 0 : i32
    return %c0_i32, %c0_i32_0 : i32, i32
  }
  func.func @transform_5(%arg0: i32) -> (i32, i32, i32) {
    %c0_i32 = arith.constant 0 : i32
    %c0_i32_0 = arith.constant 0 : i32
    %c0_i32_1 = arith.constant 0 : i32
    return %arg0, %c0_i32, %c0_i32_0 : i32, i32, i32
  }
}

</mosaic_0001>

<bundles_post_ra>
// kernel: tpu_custom_call.1
= control target key start
LH: loop header
LB: loop body
LE: loop exit
PB: predicated region body
PF: predicated region fallthrough
CT: control target
= control target key end

     0   :  { %10 = vsyncpa [#allocation3], 0  ;;  %s1101_s0 = inlined_call_operand.hbm [shape: f32[2,72,256], index: 0, kind: input, shape index: {}]   ;;  %s1102_s1 = inlined_call_operand.vmem [shape: f32[32,72], index: 1, kind: input, shape index: {}]   ;;  %s1103_s2 = inlined_call_operand.vmem [shape: f32[32,1], index: 2, kind: input, shape index: {}]   ;;  %s1104_s3 = inlined_call_operand.vmem [shape: f32[8,32], index: 3, kind: input, shape index: {}]   ;;  %s1105_s4 = inlined_call_operand.vmem [shape: f32[8,1], index: 4, kind: input, shape index: {}]   ;;  %s1106_s5 = inlined_call_operand.hbm [shape: f32[2,8,256], index: 5, kind: output, shape index: {}]  }
   0x1   :  { %12 = vsyncpa [#allocation3 + $0x1], 0 }
   0x2   :  { %13 = vsyncpa [#allocation4], 0 }
   0x3   :  { %15 = vsyncpa [#allocation4 + $0x1], 0  ;;  %s888_s18 = smov 0   ;;  %s890_s19 = smov 0  }
   0x4   :  { %s892_s20 = smov 0   ;;  %s894_s21 = smov 0  }
   0x5 LB: > { %s909_s22 = sadd.s32 4294967295, %s850_s21   ;;  %s618_s23 = sadd.s32 4294967294, %s850_s21   ;;  %s850_s21 = sphi %s894_s21, %s1118_s21   ;;  %s846_s20 = sphi %s892_s20, %s1117_s20   ;;  %s842_s19 = sphi %s890_s19, %s1116_s19   ;;  %s838_s18 = sphi %s888_s18, %s1115_s18  }
   0x6   : > { %s913_s24 = sadd.s32 1, %s850_s21   ;;  %s28_s25 = sadd.s32 1, %s846_s20 }
   0x7   : > { %s25_s26 = ssub.s32 %s850_s21, %s913_s24  ;;  %p35_p0 = scmp.ne.s32.totalorder %s846_s20, %s842_s19 }
   0x8   : > { %p26_p1 = scmp.eq.s32.totalorder %s25_s26, 0  ;;  %p36_p2 = scmp.eq.s32.totalorder %s850_s21, 0 }
   0x9   : > { %p41_p3 = scmp.ne.s32.totalorder %s842_s19, %s838_s18  ;;  %p42_p4 = scmp.eq.s32.totalorder %s909_s22, 0 }
   0xa   : > { %s925_s27 = scalar_select %p26_p1, %s846_s20, %s28_s25  }
   0xb   : > { %p37_p5 = por %p36_p2, %p35_p0  ;;  %p927_p6 = por %p42_p4, %p41_p3 }
   0xc   : > { %p149_p7 = scmp.eq.s32.totalorder %s909_s22, 1  ;;  %p155_p8 = scmp.eq.s32.totalorder %s618_s23, 1 }
   0xd   : > { %p682_p10 = scmp.lt.s32.totalorder %s850_s21, 2  ;;  %s187_s6 = sand.u32 1, %s846_s20  }
   0xe   : > { %p934_p11 = por %p149_p7, %p35_p0  ;;  %p938_p12 = por %p155_p8, %p41_p3 }
   0xf   : > { %s668_s7 = smul.u32 2304, %s850_s21  ;;  %p949_p13 = pnand %p682_p10, %p37_p5 }
  0x10   : > { %s1109_s29 = scalar_select %p934_p11, 1, 0 }
  0x11   : > { %s1110_s30 = scalar_select %p938_p12, 1, 0 }
  0x12   : > { %s667_s8 = smul.u32 144, %s187_s6  ;;  %s947_s11 = scalar_lea.hbm %s1101_s0, %s668_s7 }
  0x13   : > { %s955_s15 = scalar_lea.sflag [#allocation3], %s187_s6  ;;  %s754_s16 = scalar_lea.hbm %s947_s11, 2304 }
  0x14   : > { %s191_s13 = scalar_lea.vmem [#allocation2], %s667_s8  ;;  %p755_p0 = scmp.ne.s32.totalorder %s947_s11, %s754_s16 }
  0x15   : > { %s198_s14 = sshll.u32 %s191_s13, 4  ;;  %p756_p1 = pneg %p949_p13  ;;  %s953_s14 = int_to_ptr.vmem [resolvable:$true] %s198_s14 }
  0x16   : > { %s759_s25 = scalar_lea.hbm %s1101_s0, 4608  ;;  %p760_p4 = scmp.lt.u32.totalorder %s947_s11, %s1101_s0 }
  0x17   : > { %p757_p2 = pnand %p756_p1, %p755_p0  ;;  %p761_p5 = scmp.lt.u32.totalorder %s759_s25, %s754_s16 }
  0x18   : > { %p763_p8 = scmp.lt.u32.totalorder %s754_s16, %s947_s11 }
  0x19   : > { %p758_p3 = pneg %p757_p2  ;;  %p762_p7 = por %p761_p5, %p760_p4 }
  0x1b   : > { %p764_p10 = por %p763_p8, %p762_p7 }
  0x1d   : > { %p765_p9 = pnand %p764_p10, %p758_p3 }
  0x1f   : > { %768 = shalt.err (!%p765_p9)
}
  0x20   : > { %s769_s6 = scalar_lea.vmem %s953_s14, 2304  ;;  %s852_s8 = smov [#allocation2]  }
  0x21   : > { %p770_p0 = scmp.ne.s32.totalorder %s953_s14, %s769_s6  ;;  %s774_s9 = sshll.u32 %s852_s8, 4  ;;  %s775_s9 = int_to_ptr.vmem [resolvable:$false] %s774_s9 }
  0x22   : > { %s776_s10 = scalar_lea.vmem %s775_s9, 4608  ;;  %p777_p11 = scmp.lt.s32.totalorder %s953_s14, %s775_s9 }
  0x23   : > { %p772_p2 = pnand %p770_p0, %p756_p1  ;;  %p778_p4 = scmp.lt.s32.totalorder %s776_s10, %s769_s6 }
  0x25   : > { %p773_p12 = pneg %p772_p2  ;;  %p779_p5 = por %p778_p4, %p777_p11 }
  0x27   : > { %p780_p7 = pnand %p779_p5, %p773_p12 }
  0x29   : > { %783 = shalt.err (!%p780_p7)
}
  0x2a   : > { %s853_s13 = smov 256   ;;  %s854_s16 = smov 16  }
  0x2b   : > { %677 = dma.hbm_to_vmem [thread:$0]  (!%p949_p13), %s947_s11, 2304, %s953_s14, %s955_s15, %s853_s13, %s853_s13, %s854_s16  }
  0x2c   : > { %p622_p9 = scmp.ge.s32.totalorder %s850_s21, 1  ;;  %p206_p1 = scmp.lt.s32.totalorder %s850_s21, 3 }
  0x2e   : > { %p207_p3 = pnand %p622_p9, %p206_p1 }
  0x2f   : > { %s986_s17 = sand.u32 (!%p207_p3), 1, %s842_s19  }
  0x30   : > { %210 = sbr.rel (%p207_p3) target bundleno = 570 (0x23a), region = 40  ;;  %s213_s25 = scalar_lea.sflag (!%p207_p3), [#allocation3], %s986_s17 }
  0x31   : > { %s669_s23 = smul.u32 (!%p207_p3), 144, %s986_s17 }
  0x33   : > { %s990_s26 = scalar_lea.vmem (!%p207_p3), [#allocation2], %s669_s23 }
  0x37   : > { %829 = dma.done.wait (%p927_p6), %s213_s25, 2304  }
  0x38   : > { %831 = vsyncadd (%p927_p6), %s213_s25, 4294964992  ;;  %v855_v0 = vmov 0.0   ;;  %v856_v1 = vmov 0   ;;  %v244_v2 = vld [vmem:[%s990_s26 + $0x8] sm:$0xff]  ;;  %v246_v3 = vld [vmem:[%s990_s26 + $0x18] sm:$0xff]  ;;  %vm289_vm0 = vcmask 588800  }
  0x39   : > { %366 = vmatprep.mubr.f32.mxu0 %v855_v0  ;;  %720 = vset.pattern.permute.xlu0 %v856_v1  ;;  %v243_v4 = vld [vmem:[%s990_s26] sm:$0xff]  ;;  %v643_v5 = vpack.c.bf16 %v246_v3, %v244_v2  ;;  %v245_v6 = vld [vmem:[%s990_s26 + $0x10] sm:$0xff]  ;;  %v248_v7 = vld [vmem:[%s990_s26 + $0x28] sm:$0xff]  ;;  %vm454_vm1 = vcmask 261120   ;;  %s623_s7 = sshll.u32 %s986_s17, 4  ;;  %s642_s6 = sshll.u32 %s909_s22, 8 }
  0x3a   : > { %721 = vset.pattern.permute.xlu1 %v856_v1  ;;  %522 = vmatprep.mubr.f32.mxu1 %v855_v0  ;;  %v250_v8 = vld [vmem:[%s990_s26 + $0x38] sm:$0xff]  ;;  %v645_v9 = vpack.c.bf16 %v245_v6, %v243_v4  ;;  %v247_v11 = vld [vmem:[%s990_s26 + $0x20] sm:$0xff]  ;;  %v249_v12 = vld [vmem:[%s990_s26 + $0x30] sm:$0xff]  ;;  %s242_s8 = scalar_lea.vmem [#allocation5], %s623_s7  ;;  %s1057_s16 = scalar_lea.hbm %s1106_s5, %s642_s6 }
  0x3b   : > { %v647_v10 = vpack.c.bf16 %v250_v8, %v248_v7  ;;  %v1005_v13 = vld [vmem:[%s990_s26 + $0x48] sm:$0xff]  ;;  %644 = vmatprep.subr.bf16.mxu0 %v643_v5  ;;  %v254_v14 = vld [vmem:[%s990_s26 + $0x58] sm:$0xff]  ;;  %v649_v15 = vpack.c.bf16 %v249_v12, %v247_v11  ;;  %v1010_v17 = vld [vmem:[%s990_s26 + $0x40] sm:$0xff]  ;;  %s548_s9 = sshll.u32 %s242_s8, 4  ;;  %s534_s22 = scalar_lea.sflag [#allocation4], %s986_s17  ;;  %s1059_s9 = int_to_ptr.vmem [resolvable:$true] %s548_s9 }
  0x3c   : > { %646 = vmatpush1.bf16.msra.mxu0 %v645_v9  ;;  %v651_v16 = vpack.c.bf16 %v254_v14, %v1005_v13  ;;  %v253_v18 = vld [vmem:[%s990_s26 + $0x50] sm:$0xff]  ;;  %v256_v19 = vld [vmem:[%s990_s26 + $0x68] sm:$0xff]  ;;  %v258_v20 = vld [vmem:[%s990_s26 + $0x78] sm:$0xff]  ;;  %s784_s23 = scalar_lea.vmem %s1059_s9, 256  ;;  %p1112_p11 = scmp.ne.s32.totalorder %s1109_s29, 0 }
  0x3d   : > { %648 = vmatprep.subr.bf16.mxu0 %v647_v10  ;;  %v265_v21 = vld [vmem:[%s1103_s2] sm:$0xff]  ;;  %v653_v22 = vpack.c.bf16 %v253_v18, %v1010_v17  ;;  %v267_v23 = vld [vmem:[%s1103_s2 + $0x10] sm:$0xff]  ;;  %v655_v24 = vpack.c.bf16 %v258_v20, %v256_v19  ;;  %v266_v27 = vld [vmem:[%s1103_s2 + $0x8] sm:$0xff]  ;;  %p785_p6 = scmp.ne.s32.totalorder %s1059_s9, %s784_s23  ;;  %s857_s25 = smov [#allocation5]  }
  0x3e   : > { %271 = vperm.xlu0 %720, %v265_v21   ;;  %v255_v25 = vld [vmem:[%s990_s26 + $0x60] sm:$0xff]  ;;  %v257_v26 = vld [vmem:[%s990_s26 + $0x70] sm:$0xff]  ;;  %281 = vperm.xlu1 %721, %v267_v23   ;;  %v268_v28 = vld [vmem:[%s1103_s2 + $0x18] sm:$0xff]  ;;  %s788_s28 = sshll.u32 %s857_s25, 4  ;;  %s789_s28 = int_to_ptr.vmem [resolvable:$false] %s788_s28 }
  0x3f   : > { %v657_v29 = vpack.c.bf16 %v257_v26, %v255_v25  ;;  %v448_v30 = vld [vmem:[%s1105_s4] sm:$0xff]  ;;  %v260_v31 = vld [vmem:[%s990_s26 + $0x88] sm:$0xff]  ;;  %v263_v35 = vld [vmem:[%s1102_s1 + $0x10] sm:$0xff]  ;;  %p786_p12 = pnand %p785_p6, %p1112_p11  ;;  %s790_s11 = scalar_lea.vmem %s789_s28, 512 }
  0x40   : > { %650 = vmatpush1.bf16.msra.mxu0 %v649_v15  ;;  %v259_v32 = vld [vmem:[%s990_s26 + $0x80] sm:$0xff]  ;;  %v262_v34 = vld [vmem:[%s1102_s1 + $0x8] sm:$0xff]  ;;  %v264_v36 = vld [vmem:[%s1102_s1 + $0x18] sm:$0xff]  ;;  %p791_p8 = scmp.lt.s32.totalorder %s1059_s9, %s789_s28  ;;  %p792_p10 = scmp.lt.s32.totalorder %s790_s11, %s784_s23 }
  0x41   : > { %652 = vmatprep.subr.bf16.mxu0 %v651_v16  ;;  %v261_v33 = vld [vmem:[%s1102_s1] sm:$0xff]  ;;  %p787_p13 = pneg %p786_p12 }
  0x42   : > { %276 = vperm.xlu0 %720, %v266_v27   ;;  %286 = vperm.xlu1 %721, %v268_v28   ;;  %p793_p0 = por %p792_p10, %p791_p8 }
  0x44   : > { %654 = vmatpush1.bf16.msra.mxu0 %v653_v22  ;;  %p794_p2 = pnand %p793_p0, %p787_p13 }
  0x45   : > { %656 = vmatprep.subr.bf16.mxu0 %v655_v24 }
  0x46   : > { %451 = vperm.xlu0 %720, %v448_v30  }
  0x48   : > { %658 = vmatpush1.bf16.msra.mxu0 %v657_v29 }
  0x49   : > { %318 = vmatprep.subr.mxu0 %v260_v31 }
  0x4c   : > { %319 = vmatpush1.msra.mxu0 %v259_v32 }
  0x4d   : > { %624 = vmatmul.mubr.msk.f32.vlgmr.msra.gmra.mrb[0].mxu0 %vm289_vm0, %v261_v33 }
  0x4e   : > { %372 = vmatprep.mubr.f32.mxu0 %v855_v0 }
  0x51   : > { %625 = vmatmul.mubr.msk.f32.gmra.mrb[2].mxu0 %vm289_vm0, %v262_v34 }
  0x52   : > { %378 = vmatprep.mubr.f32.mxu0 %v855_v0 }
  0x55   : > { %626 = vmatmul.mubr.msk.f32.gmra.mrb[4].mxu0 %vm289_vm0, %v263_v35 }
  0x56   : > { %384 = vmatprep.mubr.f32.mxu0 %v855_v0 }
  0x59   : > { %627 = vmatmul.mubr.msk.f32.gmra.mrb[6].mxu0 %vm289_vm0, %v264_v36 }
  0xbd   : > { %v272_v37 = vpop.permute.xlu0 %271  ;;  %v282_v48 = vpop.permute.xlu1 %281 }
  0xc1   : > { %v277_v43 = vpop.permute.xlu0 %276  ;;  %v287_v57 = vpop.permute.xlu1 %286 }
 0x120   : > { %v368_v38 = vpop.f32.mrb[0].mxu0 }
 0x121   : > { %v369_v39 = vadd.f32 %v368_v38, %v272_v37  ;;  %v370_v40 = vpop.f32.mrb[1].mxu0 }
 0x122   : > { %v371_v41 = vadd.f32 %v370_v40, %v272_v37  ;;  %v452_v40 = vpop.permute.xlu0 %451 }
 0x123   : > { %v628_v42 = vmul.f32 -1.442695, %v369_v39 }
 0x124   : > { %v629_v44 = vmul.f32 -1.442695, %v371_v41  ;;  %v374_v45 = vpop.f32.mrb[2].mxu0 }
 0x125   : > { %722 = vpow2.f32 %v628_v42  ;;  %v375_v46 = vadd.f32 %v374_v45, %v277_v43  ;;  %v376_v47 = vpop.f32.mrb[3].mxu0 }
 0x126   : > { %724 = vpow2.f32 %v629_v44  ;;  %v377_v49 = vadd.f32 %v376_v47, %v277_v43 }
 0x127   : > { %v630_v50 = vmul.f32 -1.442695, %v375_v46 }
 0x128   : > { %v631_v51 = vmul.f32 -1.442695, %v377_v49  ;;  %v380_v52 = vpop.f32.mrb[4].mxu0 }
 0x129   : > { %726 = vpow2.f32 %v630_v50  ;;  %v381_v53 = vadd.f32 %v380_v52, %v282_v48  ;;  %v382_v54 = vpop.f32.mrb[5].mxu0 }
 0x12a   : > { %728 = vpow2.f32 %v631_v51  ;;  %v383_v55 = vadd.f32 %v382_v54, %v282_v48 }
 0x12b   : > { %v632_v56 = vmul.f32 -1.442695, %v381_v53 }
 0x12c   : > { %v633_v58 = vmul.f32 -1.442695, %v383_v55  ;;  %v386_v59 = vpop.f32.mrb[6].mxu0 }
 0x12d   : > { %730 = vpow2.f32 %v632_v56  ;;  %v387_v60 = vadd.f32 %v386_v59, %v287_v57  ;;  %v388_v61 = vpop.f32.mrb[7].mxu0 }
 0x12e   : > { %732 = vpow2.f32 %v633_v58  ;;  %v389_v62 = vadd.f32 %v388_v61, %v287_v57 }
 0x12f   : > { %v723_v63 = vpop.eup %722  ;;  %v634_v0 = vmul.f32 -1.442695, %v387_v60 }
 0x130   : > { %v725_v1 = vpop.eup %724  ;;  %v415_v2 = vadd.f32 1.0, %v723_v63  ;;  %v635_v3 = vmul.f32 -1.442695, %v389_v62 }
 0x131   : > { %v416_v4 = vadd.f32 1.0, %v725_v1  ;;  %734 = vpow2.f32 %v634_v0 }
 0x132   : > { %736 = vrcp.f32 %v415_v2 }
 0x133   : > { %v727_v5 = vpop.eup %726  ;;  %738 = vpow2.f32 %v635_v3 }
 0x134   : > { %v729_v6 = vpop.eup %728  ;;  %v417_v7 = vadd.f32 1.0, %v727_v5  ;;  %740 = vrcp.f32 %v416_v4 }
 0x135   : > { %v418_v8 = vadd.f32 1.0, %v729_v6 }
 0x136   : > { %742 = vrcp.f32 %v417_v7 }
 0x137   : > { %v731_v9 = vpop.eup %730  ;;  %744 = vrcp.f32 %v418_v8 }
 0x138   : > { %v733_v10 = vpop.eup %732  ;;  %v419_v11 = vadd.f32 1.0, %v731_v9 }
 0x139   : > { %v420_v14 = vadd.f32 1.0, %v733_v10 }
 0x13a   : > { %746 = vrcp.f32 %v419_v11 }
 0x13b   : > { %v735_v12 = vpop.eup %734 }
 0x13c   : > { %v421_v15 = vadd.f32 1.0, %v735_v12  ;;  %v737_v16 = vpop.eup %736 }
 0x13d   : > { %v739_v18 = vpop.eup %738  ;;  %v439_v23 = vmul.f32 %v737_v16, %v369_v39  ;;  %v447_v39 = vld [vmem:[%s1104_s3] sm:$0xff] }
 0x13e   : > { %748 = vrcp.f32 %v421_v15  ;;  %v741_v19 = vpop.eup %740  ;;  %v422_v20 = vadd.f32 1.0, %v739_v18 }
 0x13f   : > { %750 = vrcp.f32 %v420_v14  ;;  %v440_v25 = vmul.f32 %v741_v19, %v371_v41 }
 0x140   : > { %v743_v21 = vpop.eup %742  ;;  %752 = vrcp.f32 %v422_v20 }
 0x141   : > { %v745_v22 = vpop.eup %744  ;;  %v441_v24 = vmul.f32 %v743_v21, %v375_v46 }
 0x142   : > { %v442_v26 = vmul.f32 %v745_v22, %v377_v49 }
 0x143   : > { %v661_v27 = vpack.c.bf16 %v441_v24, %v439_v23 }
 0x144   : > { %v659_v28 = vpack.c.bf16 %v442_v26, %v440_v25  ;;  %v747_v29 = vpop.eup %746 }
 0x145   : > { %v443_v32 = vmul.f32 %v747_v29, %v381_v53 }
 0x146   : > { %660 = vmatprep.subr.bf16.mxu1 %v659_v28 }
 0x147   : > { %662 = vmatpush1.bf16.msra.mxu1 %v661_v27 }
 0x148   : > { %v749_v30 = vpop.eup %748 }
 0x149   : > { %v751_v31 = vpop.eup %750  ;;  %v445_v33 = vmul.f32 %v749_v30, %v387_v60 }
 0x14a   : > { %v753_v34 = vpop.eup %752  ;;  %v444_v36 = vmul.f32 %v751_v31, %v383_v55 }
 0x14b   : > { %v665_v35 = vpack.c.bf16 %v445_v33, %v443_v32  ;;  %v446_v37 = vmul.f32 %v753_v34, %v389_v62 }
 0x14d   : > { %v663_v38 = vpack.c.bf16 %v446_v37, %v444_v36 }
 0x14f   : > { %664 = vmatprep.subr.bf16.mxu1 %v663_v38 }
 0x150   : > { %666 = vmatpush1.bf16.msra.mxu1 %v665_v35 }
 0x153   : > { %636 = vmatmul.mubr.msk.f32.vlgmr.msra.gmra.mrb[0].mxu1 %vm454_vm1, %v447_v39 }
 0x226   : > { %v524_v41 = vpop.f32.mrb[0].mxu1 }
 0x227   : > { %v525_v42 = vadd.f32 %v524_v41, %v452_v40  ;;  %v526_v43 = vpop.f32.mrb[1].mxu1 }
 0x228   : > { %v527_v44 = vadd.f32 %v526_v43, %v452_v40 }
 0x229   : > { %v529_v45 = vadd.f32 %v525_v42, %v1010_v17 }
 0x22a   : > { %v530_v46 = vadd.f32 %v527_v44, %v1005_v13 }
 0x22b   : > { %531 = vst [vmem:[%s242_s8] sm:$0xff] %v529_v45 }
 0x22c   : > { %532 = vst [vmem:[%s242_s8 + $0x8] sm:$0xff] %v530_v46 }
 0x22d   : > { %797 = shalt.err (!%p794_p2)
}
 0x22e   : > { %s798_s17 = scalar_lea.hbm %s1057_s16, 256  ;;  %s802_s14 = scalar_lea.hbm %s1106_s5, 512 }
 0x22f   : > { %p799_p4 = scmp.ne.s32.totalorder %s1057_s16, %s798_s17  ;;  %p803_p9 = scmp.lt.u32.totalorder %s1057_s16, %s1106_s5 }
 0x230   : > { %p804_p1 = scmp.lt.u32.totalorder %s802_s14, %s798_s17  ;;  %p806_p6 = scmp.lt.u32.totalorder %s798_s17, %s1057_s16 }
 0x231   : > { %p800_p5 = pnand %p799_p4, %p1112_p11 }
 0x232   : > { %p805_p3 = por %p804_p1, %p803_p9 }
 0x233   : > { %p801_p7 = pneg %p800_p5 }
 0x234   : > { %p807_p12 = por %p806_p6, %p805_p3 }
 0x236   : > { %p808_p13 = pnand %p807_p12, %p801_p7 }
 0x238   : > { %811 = shalt.err (!%p808_p13)
}
 0x239   : > { %672 = dma.vmem_to_hbm [thread:$0]  (%p1112_p11), %s1059_s9, 256, %s1057_s16, %s534_s22  }
 0x23a PF: > { %s560_s6 = sand.u32 1, %s838_s18   ;;  %p1113_p8 = scmp.ne.s32.totalorder %s1110_s30, 0 }
 0x23b   : > { %p1114_p10 = scmp.ge.s32.totalorder %s850_s21, 2  ;;  %s561_s8 = scalar_lea.sflag [#allocation4], %s560_s6 }
 0x23d   : > { %p679_p0 = pnand %p1114_p10, %p1113_p8 }
 0x23f   : > { %833 = dma.done.wait (!%p679_p0), %s561_s8, 256  }
 0x240   : > { %835 = vsyncadd (!%p679_p0), %s561_s8, 4294967040  ;;  %p18_p2 = scmp.ge.s32.totalorder %s913_s24, 4   ;;  %s1115_s18 = smov %s842_s19 }
 0x241   : > { %s1116_s19 = smov %s846_s20  ;;  %s1117_s20 = smov %s925_s27 }
 0x242   : > { %s1118_s21 = smov %s913_s24  ;;  %20 = sbr.rel (!%p18_p2) target bundleno = 5 (0x5), region = 85 }
 0x249   :  { %566 = vsyncpa [#allocation3], 1 }
 0x24a   :  { %568 = vsyncpa [#allocation3 + $0x1], 1 }
 0x24b   :  { %569 = vsyncpa [#allocation4], 1 }
 0x24c   :  { %571 = vsyncpa [#allocation4 + $0x1], 1 }

</bundles_post_ra>
